<compile_context>
chip_gen: v6e
topology: v6e:2x2x1
jax: 0.10.0
libtpu: 0.0.40
codegen_flags: <defaults>
</compile_context>

<pallas_src>
import jax
import jax.numpy as jnp
from jax import lax
from jax.experimental import pallas as pl
from jax.experimental.pallas import tpu as pltpu

LN_EPS = 1e-5

# Contract the lane (last) dims of both operands: hidden (N,F) x W2 (E,F) -> (N,E).
_TRANS_B_DIMS = (((1,), (1,)), ((), ()))


# ------------------------------ fused kernel ------------------------------

def _layer_norm(h, gamma, beta, inv_e):
    # Fused single-pass LN: sum(h) and sum(h*h) together, then mean/var.
    s1 = jnp.sum(h, axis=-1, keepdims=True)
    s2 = jnp.sum(h * h, axis=-1, keepdims=True)
    mu = s1 * inv_e
    var = s2 * inv_e - mu * mu
    return (h - mu) * lax.rsqrt(var + LN_EPS) * gamma + beta


def _fused_encoder_kernel(x_ref,
                          wattn_ref, battn_ref,
                          g1_ref, be1_ref,
                          w1_ref, b1_ref, w2_ref, b2_ref,
                          g2_ref, be2_ref,
                          o_ref):
    layer = pl.program_id(0)
    inv_e = 1.0 / x_ref.shape[-1]

    # The output block has the same block index for every layer, so it stays
    # resident in VMEM across the (sequential) layer axis and doubles as the
    # cross-layer activation carry.  Load the input only on the first layer.
    @pl.when(layer == 0)
    def _():
        o_ref[...] = x_ref[...]

    x = o_ref[...]

    # ---- self-attention, collapsed offline to one bf16 matmul (seq_len == 1) ----
    sa = jnp.dot(x.astype(wattn_ref.dtype), wattn_ref[...],
                 preferred_element_type=jnp.float32) + battn_ref[...]

    # ---- residual + LayerNorm1 (post-norm, PyTorch default norm_first=False) ----
    x1 = _layer_norm(x + sa, g1_ref[...], be1_ref[...], inv_e)

    # ---- feed-forward: Linear(E->F) -> ReLU -> Linear(F->E) ----
    # W1 stored transposed (E,F): lane-dense, standard contraction.
    hidden = jnp.dot(x1.astype(w1_ref.dtype), w1_ref[...],
                     preferred_element_type=jnp.float32) + b1_ref[...]
    hidden = jnp.maximum(hidden, 0.0)
    # W2 stored in natural (E,F) layout: lane-dense, trans-B contraction on the MXU
    # (same dimension-numbers pattern as flash-attention's q @ k^T, no XLU transpose).
    ff = lax.dot_general(hidden.astype(w2_ref.dtype), w2_ref[...],
                         dimension_numbers=_TRANS_B_DIMS,
                         preferred_element_type=jnp.float32) + b2_ref[...]

    # ---- residual + LayerNorm2; write carry/output ----
    out = _layer_norm(x1 + ff, g2_ref[...], be2_ref[...], inv_e)
    o_ref[...] = out.astype(o_ref.dtype)


def transformer_core(x, fused):
    """Full 2-layer encoder forward in a single pallas_call.

    x: (N, E) float32 — N rows are batch elements of seq_len=1 (matches the PyTorch
    module's x.unsqueeze(0)); the attention collapse is only valid for seq_len == 1.
    fused: dict of layer-stacked params (leading dim = n_layers).
    """
    N, E = x.shape
    L = fused["w_attn"].shape[0]
    F = fused["w1_t"].shape[-1]

    row_spec = pl.BlockSpec((N, E), lambda l: (0, 0))

    def per_layer(*tail):
        nt = len(tail)
        return pl.BlockSpec((None,) + tuple(tail), lambda l: (l,) + (0,) * nt)

    return pl.pallas_call(
        _fused_encoder_kernel,
        out_shape=jax.ShapeDtypeStruct((N, E), x.dtype),
        grid_spec=pltpu.PrefetchScalarGridSpec(
            num_scalar_prefetch=0,
            grid=(L,),
            in_specs=[
                row_spec,                             # x
                per_layer(E, E), per_layer(1, E),     # W_attn (bf16), b_attn
                per_layer(1, E), per_layer(1, E),     # LN1 gamma, beta
                per_layer(E, F), per_layer(1, F),     # W1^T (bf16, lane-dense), b1
                per_layer(E, F), per_layer(1, E),     # W2 (bf16, natural lane-dense), b2
                per_layer(1, E), per_layer(1, E),     # LN2 gamma, beta
            ],
            out_specs=row_spec,
        ),
        compiler_params=pltpu.CompilerParams(
            dimension_semantics=("arbitrary",)),      # layer axis is sequential
    )(x,
      fused["w_attn"], fused["b_attn"],
      fused["ln1_g"], fused["ln1_b"],
      fused["w1_t"], fused["b1"],
      fused["w2"], fused["b2"],
      fused["ln2_g"], fused["ln2_b"])


# ------------------------- parameter construction -------------------------

def make_layer_params(key, d_model, dim_feedforward):
    """Raw (PyTorch-layout) f32 parameters for one encoder layer."""
    ks = jax.random.split(key, 8)
    s = 0.02
    wv = jax.random.normal(ks[0], (d_model, d_model), jnp.float32) * s   # V slice of in_proj
    bv = jax.random.normal(ks[1], (d_model,), jnp.float32) * s
    wo = jax.random.normal(ks[2], (d_model, d_model), jnp.float32) * s   # out_proj
    bo = jax.random.normal(ks[3], (d_model,), jnp.float32) * s
    w1 = jax.random.normal(ks[4], (dim_feedforward, d_model), jnp.float32) * s
    b1 = jax.random.normal(ks[5], (dim_feedforward,), jnp.float32) * s
    w2 = jax.random.normal(ks[6], (d_model, dim_feedforward), jnp.float32) * s
    b2 = jax.random.normal(ks[7], (d_model,), jnp.float32) * s
    return {
        "wv": wv, "bv": bv, "wo": wo, "bo": bo,
        "w1": w1, "b1": b1, "w2": w2, "b2": b2,
        "ln1_g": jnp.ones((d_model,), jnp.float32),
        "ln1_b": jnp.zeros((d_model,), jnp.float32),
        "ln2_g": jnp.ones((d_model,), jnp.float32),
        "ln2_b": jnp.zeros((d_model,), jnp.float32),
    }


def fuse_params(layer_params):
    """Collapse Wv@Wo offline, cast matmul weights to bf16, stack along a layer axis.

    W1 is stored transposed (E,F); W2 is stored in its NATURAL (E,F) layout — both are
    lane-dense (minor dim = 2048), avoiding the 4x lane padding of a (2048,32) slab.
    """
    def one(p):
        w_attn = (p["wv"].T @ p["wo"].T).astype(jnp.bfloat16)   # (E, E)
        b_attn = p["bv"] @ p["wo"].T + p["bo"]                  # (E,), f32
        return dict(
            w_attn=w_attn,
            b_attn=b_attn.reshape(1, -1),
            ln1_g=p["ln1_g"].reshape(1, -1), ln1_b=p["ln1_b"].reshape(1, -1),
            w1_t=p["w1"].T.astype(jnp.bfloat16), b1=p["b1"].reshape(1, -1),
            w2=p["w2"].astype(jnp.bfloat16),     b2=p["b2"].reshape(1, -1),
            ln2_g=p["ln2_g"].reshape(1, -1), ln2_b=p["ln2_b"].reshape(1, -1),
        )
    per = [one(p) for p in layer_params]
    return {k: jnp.stack([d[k] for d in per], axis=0) for k in per[0]}


# ------------------------- pure-JAX f32 reference -------------------------

def _layer_ref(x, p):
    sa = (x @ p["wv"].T + p["bv"]) @ p["wo"].T + p["bo"]
    h = x + sa
    mu = h.mean(-1, keepdims=True)
    var = ((h - mu) ** 2).mean(-1, keepdims=True)
    x1 = (h - mu) / jnp.sqrt(var + LN_EPS) * p["ln1_g"] + p["ln1_b"]
    ff = jnp.maximum(x1 @ p["w1"].T + p["b1"], 0.0) @ p["w2"].T + p["b2"]
    h2 = x1 + ff
    mu2 = h2.mean(-1, keepdims=True)
    var2 = ((h2 - mu2) ** 2).mean(-1, keepdims=True)
    return (h2 - mu2) / jnp.sqrt(var2 + LN_EPS) * p["ln2_g"] + p["ln2_b"]


def transformer_core_ref(x, layer_params):
    for p in layer_params:
        x = _layer_ref(x, p)
    return x


if __name__ == "__main__":
    STATE_SIZE = 32          # d_model (divisible by nhead=4)
    DIM_FF = 2048            # PyTorch TransformerEncoderLayer default dim_feedforward
    N_ROWS = 8               # rows of x; PyTorch treats them as batch elems of seq_len=1
    # TODO(synk): for real throughput, batch N_ROWS >= 128 per call (the per-call cost
    # here is fixed overhead + weight DMA, independent of N).

    root = jax.random.PRNGKey(0)
    kx, k0, k1 = jax.random.split(root, 3)

    x = jax.random.normal(kx, (N_ROWS, STATE_SIZE), jnp.float32)
    layer_params = [
        make_layer_params(k0, STATE_SIZE, DIM_FF),
        make_layer_params(k1, STATE_SIZE, DIM_FF),
    ]
    fused = fuse_params(layer_params)

    fwd = jax.jit(transformer_core)
    out = jax.block_until_ready(fwd(x, fused))

    ref = transformer_core_ref(x, layer_params)
    assert out.shape == (N_ROWS, STATE_SIZE)
    # Tolerance widened vs. f32 reference: FF/attention weights (and the ReLU hidden
    # activations fed to the second FF matmul) are bf16 in the kernel.
    max_err = float(jnp.max(jnp.abs(out - ref)))
    assert jnp.allclose(out, ref, atol=2e-2, rtol=2e-2), (
        "kernel mismatch vs reference; max abs diff = %g" % max_err)

    print("KERNEL_OK")
</pallas_src>

<mosaic_0001>
module attributes {stable_mosaic.version = 11 : i64} {
  func.func @_fused_encoder_kernel(%arg0: i32, %arg1: memref<8x32xf32, #tpu.memory_space<vmem>>, %arg2: memref<1x32x32xbf16, #tpu.memory_space<vmem>>, %arg3: memref<1x1x32xf32, #tpu.memory_space<vmem>>, %arg4: memref<1x1x32xf32, #tpu.memory_space<vmem>>, %arg5: memref<1x1x32xf32, #tpu.memory_space<vmem>>, %arg6: memref<1x32x2048xbf16, #tpu.memory_space<vmem>>, %arg7: memref<1x1x2048xf32, #tpu.memory_space<vmem>>, %arg8: memref<1x32x2048xbf16, #tpu.memory_space<vmem>>, %arg9: memref<1x1x32xf32, #tpu.memory_space<vmem>>, %arg10: memref<1x1x32xf32, #tpu.memory_space<vmem>>, %arg11: memref<1x1x32xf32, #tpu.memory_space<vmem>>, %arg12: memref<8x32xf32, #tpu.memory_space<vmem>>) attributes {dimension_semantics = [#tpu.dimension_semantics<arbitrary>], iteration_bounds = array<i64: 2>, scalar_prefetch = 0 : i64, scratch_operands = 0 : i64, tpu.core_type = #tpu.core_type<tc>, window_params = [{pipeline_mode = #tpu.pipeline_mode<synchronous>, transform_indices = @transform_0, window_bounds = array<i64: 8, 32>}, {transform_indices = @transform_1, window_bounds = array<i64: 1, 32, 32>}, {transform_indices = @transform_2, window_bounds = array<i64: 1, 1, 32>}, {transform_indices = @transform_3, window_bounds = array<i64: 1, 1, 32>}, {transform_indices = @transform_4, window_bounds = array<i64: 1, 1, 32>}, {transform_indices = @transform_5, window_bounds = array<i64: 1, 32, 2048>}, {transform_indices = @transform_6, window_bounds = array<i64: 1, 1, 2048>}, {transform_indices = @transform_7, window_bounds = array<i64: 1, 32, 2048>}, {transform_indices = @transform_8, window_bounds = array<i64: 1, 1, 32>}, {transform_indices = @transform_9, window_bounds = array<i64: 1, 1, 32>}, {transform_indices = @transform_10, window_bounds = array<i64: 1, 1, 32>}, {pipeline_mode = #tpu.pipeline_mode<synchronous>, transform_indices = @transform_11, window_bounds = array<i64: 8, 32>}]} {
    %c0_i32 = arith.constant 0 : i32
    %0 = arith.cmpi eq, %arg0, %c0_i32 : i32
    %1 = arith.extui %0 : i1 to i32
    %c0_i32_0 = arith.constant 0 : i32
    %2 = arith.cmpi ne, %1, %c0_i32_0 : i32
    scf.if %2 {
      %c0_47 = arith.constant 0 : index
      %c0_48 = arith.constant 0 : index
      %85 = vector.load %arg1[%c0_47, %c0_48] : memref<8x32xf32, #tpu.memory_space<vmem>>, vector<8x32xf32>
      %c0_49 = arith.constant 0 : index
      %c0_50 = arith.constant 0 : index
      %86 = vector.load %arg12[%c0_49, %c0_50] : memref<8x32xf32, #tpu.memory_space<vmem>>, vector<8x32xf32>
      tpu.vector_store %arg12[%c0_49, %c0_50], %85 {strides = array<i32>} : memref<8x32xf32, #tpu.memory_space<vmem>>, vector<8x32xf32>,
    } else {
    }
    %c0 = arith.constant 0 : index
    %c0_1 = arith.constant 0 : index
    %3 = vector.load %arg12[%c0, %c0_1] : memref<8x32xf32, #tpu.memory_space<vmem>>, vector<8x32xf32>
    %4 = arith.truncf %3 : vector<8x32xf32> to vector<8x32xbf16>
    %c0_2 = arith.constant 0 : index
    %c0_3 = arith.constant 0 : index
    %c0_4 = arith.constant 0 : index
    %5 = vector.load %arg2[%c0_2, %c0_3, %c0_4] : memref<1x32x32xbf16, #tpu.memory_space<vmem>>, vector<1x32x32xbf16>
    %6 = vector.shape_cast %5 : vector<1x32x32xbf16> to vector<32x32xbf16>
    %cst = arith.constant dense<0.000000e+00> : vector<8x32xf32>
    %7 = tpu.matmul %4, %6, %cst {dimension_numbers = #tpu.dot_dimension_numbers<[1], [0], [0], [1], [0, 0, 1, 1], [], []>} : vector<8x32xbf16>, vector<32x32xbf16>, vector<8x32xf32> -> vector<8x32xf32>
    %c0_5 = arith.constant 0 : index
    %c0_6 = arith.constant 0 : index
    %c0_7 = arith.constant 0 : index
    %8 = vector.load %arg3[%c0_5, %c0_6, %c0_7] : memref<1x1x32xf32, #tpu.memory_space<vmem>>, vector<1x1x32xf32>
    %9 = vector.shape_cast %8 : vector<1x1x32xf32> to vector<1x32xf32>
    %10 = vector.broadcast %9 : vector<1x32xf32> to vector<8x32xf32>
    %11 = arith.addf %7, %10 : vector<8x32xf32>
    %12 = arith.addf %3, %11 : vector<8x32xf32>
    %c0_8 = arith.constant 0 : index
    %c0_9 = arith.constant 0 : index
    %c0_10 = arith.constant 0 : index
    %13 = vector.load %arg4[%c0_8, %c0_9, %c0_10] : memref<1x1x32xf32, #tpu.memory_space<vmem>>, vector<1x1x32xf32>
    %14 = vector.shape_cast %13 : vector<1x1x32xf32> to vector<1x32xf32>
    %c0_11 = arith.constant 0 : index
    %c0_12 = arith.constant 0 : index
    %c0_13 = arith.constant 0 : index
    %15 = vector.load %arg5[%c0_11, %c0_12, %c0_13] : memref<1x1x32xf32, #tpu.memory_space<vmem>>, vector<1x1x32xf32>
    %16 = vector.shape_cast %15 : vector<1x1x32xf32> to vector<1x32xf32>
    %cst_14 = arith.constant dense<0.000000e+00> : vector<8xf32>
    %17 = vector.multi_reduction <add>, %12, %cst_14 [1] : vector<8x32xf32> to vector<8xf32>
    %18 = vector.shape_cast %17 : vector<8xf32> to vector<8x1xf32>
    %19 = arith.mulf %12, %12 : vector<8x32xf32>
    %cst_15 = arith.constant dense<0.000000e+00> : vector<8xf32>
    %20 = vector.multi_reduction <add>, %19, %cst_15 [1] : vector<8x32xf32> to vector<8xf32>
    %21 = vector.shape_cast %20 : vector<8xf32> to vector<8x1xf32>
    %cst_16 = arith.constant 3.125000e-02 : f32
    %22 = vector.broadcast %cst_16 : f32 to vector<8x1xf32>
    %23 = arith.mulf %18, %22 : vector<8x1xf32>
    %cst_17 = arith.constant 3.125000e-02 : f32
    %24 = vector.broadcast %cst_17 : f32 to vector<8x1xf32>
    %25 = arith.mulf %21, %24 : vector<8x1xf32>
    %26 = arith.mulf %23, %23 : vector<8x1xf32>
    %27 = arith.subf %25, %26 : vector<8x1xf32>
    %28 = vector.broadcast %23 : vector<8x1xf32> to vector<8x32xf32>
    %29 = arith.subf %12, %28 : vector<8x32xf32>
    %cst_18 = arith.constant 9.99999974E-6 : f32
    %30 = vector.broadcast %cst_18 : f32 to vector<8x1xf32>
    %31 = arith.addf %27, %30 : vector<8x1xf32>
    %32 = math.rsqrt %31 : vector<8x1xf32>
    %33 = vector.broadcast %32 : vector<8x1xf32> to vector<8x32xf32>
    %34 = arith.mulf %29, %33 : vector<8x32xf32>
    %35 = vector.broadcast %14 : vector<1x32xf32> to vector<8x32xf32>
    %36 = arith.mulf %34, %35 : vector<8x32xf32>
    %37 = vector.broadcast %16 : vector<1x32xf32> to vector<8x32xf32>
    %38 = arith.addf %36, %37 : vector<8x32xf32>
    %39 = arith.truncf %38 : vector<8x32xf32> to vector<8x32xbf16>
    %c0_19 = arith.constant 0 : index
    %c0_20 = arith.constant 0 : index
    %c0_21 = arith.constant 0 : index
    %40 = vector.load %arg6[%c0_19, %c0_20, %c0_21] : memref<1x32x2048xbf16, #tpu.memory_space<vmem>>, vector<1x32x2048xbf16>
    %41 = vector.shape_cast %40 : vector<1x32x2048xbf16> to vector<32x2048xbf16>
    %cst_22 = arith.constant dense<0.000000e+00> : vector<8x2048xf32>
    %42 = tpu.matmul %39, %41, %cst_22 {dimension_numbers = #tpu.dot_dimension_numbers<[1], [0], [0], [1], [0, 0, 1, 1], [], []>} : vector<8x32xbf16>, vector<32x2048xbf16>, vector<8x2048xf32> -> vector<8x2048xf32>
    %c0_23 = arith.constant 0 : index
    %c0_24 = arith.constant 0 : index
    %c0_25 = arith.constant 0 : index
    %43 = vector.load %arg7[%c0_23, %c0_24, %c0_25] : memref<1x1x2048xf32, #tpu.memory_space<vmem>>, vector<1x1x2048xf32>
    %44 = vector.shape_cast %43 : vector<1x1x2048xf32> to vector<1x2048xf32>
    %45 = vector.broadcast %44 : vector<1x2048xf32> to vector<8x2048xf32>
    %46 = arith.addf %42, %45 : vector<8x2048xf32>
    %cst_26 = arith.constant 0.000000e+00 : f32
    %47 = vector.broadcast %cst_26 : f32 to vector<8x2048xf32>
    %48 = arith.maximumf %46, %47 : vector<8x2048xf32>
    %49 = arith.truncf %48 : vector<8x2048xf32> to vector<8x2048xbf16>
    %c0_27 = arith.constant 0 : index
    %c0_28 = arith.constant 0 : index
    %c0_29 = arith.constant 0 : index
    %50 = vector.load %arg8[%c0_27, %c0_28, %c0_29] : memref<1x32x2048xbf16, #tpu.memory_space<vmem>>, vector<1x32x2048xbf16>
    %51 = vector.shape_cast %50 : vector<1x32x2048xbf16> to vector<32x2048xbf16>
    %cst_30 = arith.constant dense<0.000000e+00> : vector<8x32xf32>
    %52 = tpu.matmul %49, %51, %cst_30 {dimension_numbers = #tpu.dot_dimension_numbers<[1], [1], [0], [0], [0, 0, 1, 0], [], []>} : vector<8x2048xbf16>, vector<32x2048xbf16>, vector<8x32xf32> -> vector<8x32xf32>
    %c0_31 = arith.constant 0 : index
    %c0_32 = arith.constant 0 : index
    %c0_33 = arith.constant 0 : index
    %53 = vector.load %arg9[%c0_31, %c0_32, %c0_33] : memref<1x1x32xf32, #tpu.memory_space<vmem>>, vector<1x1x32xf32>
    %54 = vector.shape_cast %53 : vector<1x1x32xf32> to vector<1x32xf32>
    %55 = vector.broadcast %54 : vector<1x32xf32> to vector<8x32xf32>
    %56 = arith.addf %52, %55 : vector<8x32xf32>
    %57 = arith.addf %38, %56 : vector<8x32xf32>
    %c0_34 = arith.constant 0 : index
    %c0_35 = arith.constant 0 : index
    %c0_36 = arith.constant 0 : index
    %58 = vector.load %arg10[%c0_34, %c0_35, %c0_36] : memref<1x1x32xf32, #tpu.memory_space<vmem>>, vector<1x1x32xf32>
    %59 = vector.shape_cast %58 : vector<1x1x32xf32> to vector<1x32xf32>
    %c0_37 = arith.constant 0 : index
    %c0_38 = arith.constant 0 : index
    %c0_39 = arith.constant 0 : index
    %60 = vector.load %arg11[%c0_37, %c0_38, %c0_39] : memref<1x1x32xf32, #tpu.memory_space<vmem>>, vector<1x1x32xf32>
    %61 = vector.shape_cast %60 : vector<1x1x32xf32> to vector<1x32xf32>
    %cst_40 = arith.constant dense<0.000000e+00> : vector<8xf32>
    %62 = vector.multi_reduction <add>, %57, %cst_40 [1] : vector<8x32xf32> to vector<8xf32>
    %63 = vector.shape_cast %62 : vector<8xf32> to vector<8x1xf32>
    %64 = arith.mulf %57, %57 : vector<8x32xf32>
    %cst_41 = arith.constant dense<0.000000e+00> : vector<8xf32>
    %65 = vector.multi_reduction <add>, %64, %cst_41 [1] : vector<8x32xf32> to vector<8xf32>
    %66 = vector.shape_cast %65 : vector<8xf32> to vector<8x1xf32>
    %cst_42 = arith.constant 3.125000e-02 : f32
    %67 = vector.broadcast %cst_42 : f32 to vector<8x1xf32>
    %68 = arith.mulf %63, %67 : vector<8x1xf32>
    %cst_43 = arith.constant 3.125000e-02 : f32
    %69 = vector.broadcast %cst_43 : f32 to vector<8x1xf32>
    %70 = arith.mulf %66, %69 : vector<8x1xf32>
    %71 = arith.mulf %68, %68 : vector<8x1xf32>
    %72 = arith.subf %70, %71 : vector<8x1xf32>
    %73 = vector.broadcast %68 : vector<8x1xf32> to vector<8x32xf32>
    %74 = arith.subf %57, %73 : vector<8x32xf32>
    %cst_44 = arith.constant 9.99999974E-6 : f32
    %75 = vector.broadcast %cst_44 : f32 to vector<8x1xf32>
    %76 = arith.addf %72, %75 : vector<8x1xf32>
    %77 = math.rsqrt %76 : vector<8x1xf32>
    %78 = vector.broadcast %77 : vector<8x1xf32> to vector<8x32xf32>
    %79 = arith.mulf %74, %78 : vector<8x32xf32>
    %80 = vector.broadcast %59 : vector<1x32xf32> to vector<8x32xf32>
    %81 = arith.mulf %79, %80 : vector<8x32xf32>
    %82 = vector.broadcast %61 : vector<1x32xf32> to vector<8x32xf32>
    %83 = arith.addf %81, %82 : vector<8x32xf32>
    %c0_45 = arith.constant 0 : index
    %c0_46 = arith.constant 0 : index
    %84 = vector.load %arg12[%c0_45, %c0_46] : memref<8x32xf32, #tpu.memory_space<vmem>>, vector<8x32xf32>
    tpu.vector_store %arg12[%c0_45, %c0_46], %83 {strides = array<i32>} : memref<8x32xf32, #tpu.memory_space<vmem>>, vector<8x32xf32>,
    return
  }
  func.func @transform_0(%arg0: i32) -> (i32, i32) {
    %c0_i32 = arith.constant 0 : i32
    %c0_i32_0 = arith.constant 0 : i32
    %c0_i32_1 = arith.constant 0 : i32
    return %c0_i32, %c0_i32_0 : i32, i32
  }
  func.func @transform_1(%arg0: i32) -> (i32, i32, i32) {
    %c0_i32 = arith.constant 0 : i32
    %c0_i32_0 = arith.constant 0 : i32
    %c0_i32_1 = arith.constant 0 : i32
    return %arg0, %c0_i32, %c0_i32_0 : i32, i32, i32
  }
  func.func @transform_2(%arg0: i32) -> (i32, i32, i32) {
    %c0_i32 = arith.constant 0 : i32
    %c0_i32_0 = arith.constant 0 : i32
    %c0_i32_1 = arith.constant 0 : i32
    return %arg0, %c0_i32, %c0_i32_0 : i32, i32, i32
  }
  func.func @transform_3(%arg0: i32) -> (i32, i32, i32) {
    %c0_i32 = arith.constant 0 : i32
    %c0_i32_0 = arith.constant 0 : i32
    %c0_i32_1 = arith.constant 0 : i32
    return %arg0, %c0_i32, %c0_i32_0 : i32, i32, i32
  }
  func.func @transform_4(%arg0: i32) -> (i32, i32, i32) {
    %c0_i32 = arith.constant 0 : i32
    %c0_i32_0 = arith.constant 0 : i32
    %c0_i32_1 = arith.constant 0 : i32
    return %arg0, %c0_i32, %c0_i32_0 : i32, i32, i32
  }
  func.func @transform_5(%arg0: i32) -> (i32, i32, i32) {
    %c0_i32 = arith.constant 0 : i32
    %c0_i32_0 = arith.constant 0 : i32
    %c0_i32_1 = arith.constant 0 : i32
    return %arg0, %c0_i32, %c0_i32_0 : i32, i32, i32
  }
  func.func @transform_6(%arg0: i32) -> (i32, i32, i32) {
    %c0_i32 = arith.constant 0 : i32
    %c0_i32_0 = arith.constant 0 : i32
    %c0_i32_1 = arith.constant 0 : i32
    return %arg0, %c0_i32, %c0_i32_0 : i32, i32, i32
  }
  func.func @transform_7(%arg0: i32) -> (i32, i32, i32) {
    %c0_i32 = arith.constant 0 : i32
    %c0_i32_0 = arith.constant 0 : i32
    %c0_i32_1 = arith.constant 0 : i32
    return %arg0, %c0_i32, %c0_i32_0 : i32, i32, i32
  }
  func.func @transform_8(%arg0: i32) -> (i32, i32, i32) {
    %c0_i32 = arith.constant 0 : i32
    %c0_i32_0 = arith.constant 0 : i32
    %c0_i32_1 = arith.constant 0 : i32
    return %arg0, %c0_i32, %c0_i32_0 : i32, i32, i32
  }
  func.func @transform_9(%arg0: i32) -> (i32, i32, i32) {
    %c0_i32 = arith.constant 0 : i32
    %c0_i32_0 = arith.constant 0 : i32
    %c0_i32_1 = arith.constant 0 : i32
    return %arg0, %c0_i32, %c0_i32_0 : i32, i32, i32
  }
  func.func @transform_10(%arg0: i32) -> (i32, i32, i32) {
    %c0_i32 = arith.constant 0 : i32
    %c0_i32_0 = arith.constant 0 : i32
    %c0_i32_1 = arith.constant 0 : i32
    return %arg0, %c0_i32, %c0_i32_0 : i32, i32, i32
  }
  func.func @transform_11(%arg0: i32) -> (i32, i32) {
    %c0_i32 = arith.constant 0 : i32
    %c0_i32_0 = arith.constant 0 : i32
    %c0_i32_1 = arith.constant 0 : i32
    return %c0_i32, %c0_i32_0 : i32, i32
  }
}

</mosaic_0001>

<bundles_post_ra>
// kernel: transformer_core.1
= control target key start
LH: loop header
LB: loop body
LE: loop exit
PB: predicated region body
PF: predicated region fallthrough
CT: control target
= control target key end

     0   :  { %s3157_s0 = inlined_call_operand.hbm [shape: f32[8,32], index: 0, kind: input, shape index: {}]   ;;  %s3158_s1 = inlined_call_operand.hbm [shape: bf16[2,32,32], index: 1, kind: input, shape index: {}]   ;;  %s3159_s2 = inlined_call_operand.vmem [shape: f32[2,1,32], index: 2, kind: input, shape index: {}]   ;;  %s3160_s3 = inlined_call_operand.vmem [shape: f32[2,1,32], index: 3, kind: input, shape index: {}]   ;;  %s3161_s4 = inlined_call_operand.vmem [shape: f32[2,1,32], index: 4, kind: input, shape index: {}]   ;;  %s3162_s5 = inlined_call_operand.hbm [shape: bf16[2,32,2048], index: 5, kind: input, shape index: {}]   ;;  %s3163_s6 = inlined_call_operand.hbm [shape: f32[2,1,2048], index: 6, kind: input, shape index: {}]   ;;  %s3164_s7 = inlined_call_operand.hbm [shape: bf16[2,32,2048], index: 7, kind: input, shape index: {}]   ;;  %s3165_s8 = inlined_call_operand.hbm [shape: f32[2,1,32], index: 8, kind: input, shape index: {}]   ;;  %s3166_s9 = inlined_call_operand.vmem [shape: f32[2,1,32], index: 9, kind: input, shape index: {}]   ;;  %s3167_s10 = inlined_call_operand.vmem [shape: f32[2,1,32], index: 10, kind: input, shape index: {}]   ;;  %s3168_s11 = inlined_call_operand.hbm [shape: f32[8,32], index: 11, kind: output, shape index: {}]  }
   0x1   :  { %3182 = sst [smem:[#allocation22_spill]] %s3157_s0 }
   0x2   :  { %3183 = sst [smem:[#allocation23_spill]] %s3158_s1 }
   0x3   :  { %3184 = sst [smem:[#allocation24_spill]] %s3162_s5 }
   0x4   :  { %3185 = sst [smem:[#allocation25_spill]] %s3163_s6 }
   0x5   :  { %3186 = sst [smem:[#allocation26_spill]] %s3164_s7 }
   0x6   :  { %3187 = sst [smem:[#allocation27_spill]] %s3168_s11 }
   0x7   :  { %16 = vsyncpa [#allocation3], 0 }
   0x8   :  { %17 = vsyncpa [#allocation6], 0 }
   0x9   :  { %19 = vsyncpa [#allocation6 + $0x1], 0 }
   0xa   :  { %20 = vsyncpa [#allocation9], 0 }
   0xb   :  { %22 = vsyncpa [#allocation9 + $0x1], 0 }
   0xc   :  { %23 = vsyncpa [#allocation12], 0 }
   0xd   :  { %25 = vsyncpa [#allocation12 + $0x1], 0 }
   0xe   :  { %26 = vsyncpa [#allocation4], 0  ;;  %s2648_s17 = smov 0   ;;  %s2650_s18 = smov 0  }
   0xf   :  { %s2652_s19 = smov 0   ;;  %s2654_s20 = smov 0  }
  0x10 LB: > { %3188 = sst [smem:[#allocation19_spill]] %s2569_s19  ;;  %s2669_s21 = sadd.s32 1, %s2573_s20   ;;  %s2573_s20 = sphi %s2654_s20, %s3213_s20   ;;  %s2569_s19 = sphi %s2652_s19, %s3215_s19   ;;  %s2565_s18 = sphi %s2650_s18, %s3217_s18   ;;  %s2561_s17 = sphi %s2648_s17, %s3216_s17  }
  0x11   : > { %3189 = sst [smem:[#allocation20_spill]] %s2669_s21  ;;  %s60_s22 = sadd.s32 1, %s2569_s19 }
  0x12   : > { %s57_s23 = ssub.s32 %s2573_s20, %s2669_s21  ;;  %p67_p0 = scmp.ne.s32.totalorder %s2569_s19, %s2565_s18 }
  0x13   : > { %p58_p1 = scmp.eq.s32.totalorder %s57_s23, 0  ;;  %p68_p2 = scmp.eq.s32.totalorder %s2573_s20, 0 }
  0x14   : > { %p2283_p3 = scmp.lt.s32.totalorder %s2573_s20, 2  ;;  %s3171_s25 = sand.u32 1, %s2573_s20  }
  0x15   : > { %s2679_s24 = scalar_select %p58_p1, %s2569_s19, %s60_s22  }
  0x16   : > { %p69_p4 = por %p68_p2, %p67_p0  ;;  %s2683_s26 = sand.u32 1, %s2569_s19  }
  0x17   : > { %3190 = sst [smem:[#allocation21_spill]] %s2679_s24  ;;  %s3169_s27 = sshll.u32 %s2683_s26, 4 }
  0x18   : > { %s3170_s28 = sshll.u32 %s2573_s20, 8  ;;  %s3191_s1 = sld [smem:[#allocation23_spill]] }
  0x19   : > { %s367_s13 = scalar_lea.vmem [#allocation5], %s3169_s27  ;;  %p2696_p5 = pnand %p2283_p3, %p69_p4 }
  0x1a   : > { %s374_s14 = sshll.u32 %s367_s13, 4  ;;  %s2704_s16 = scalar_lea.sflag [#allocation6], %s3171_s25  ;;  %s2700_s14 = int_to_ptr.vmem [resolvable:$true] %s374_s14 }
  0x1b   : > { %p2710_p7 = pneg %p2696_p5 }
  0x1e   : > { %s2692_s12 = scalar_lea.hbm %s3191_s1, %s3170_s28  ;;  %s2338_s13 = scalar_lea.hbm %s3191_s1, 512 }
  0x1f   : > { %s2333_s22 = scalar_lea.hbm %s2692_s12, 256  ;;  %p2339_p10 = scmp.lt.s32.totalorder %s2692_s12, %s3191_s1 }
  0x20   : > { %p2334_p6 = scmp.ne.s32.totalorder %s2692_s12, %s2333_s22  ;;  %p2340_p11 = scmp.lt.s32.totalorder %s2338_s13, %s2333_s22 }
  0x22   : > { %p2336_p8 = pnand %p2710_p7, %p2334_p6  ;;  %p2341_p12 = por %p2340_p11, %p2339_p10 }
  0x24   : > { %p2337_p9 = pneg %p2336_p8 }
  0x26   : > { %p2342_p13 = pnand %p2341_p12, %p2337_p9 }
  0x28   : > { %2345 = shalt.err (!%p2342_p13)
}
  0x29   : > { %s2346_s25 = scalar_lea.vmem %s2700_s14, 256  ;;  %s2575_s24 = smov [#allocation5]  }
  0x2a   : > { %p2347_p0 = scmp.ne.s32.totalorder %s2700_s14, %s2346_s25  ;;  %s2351_s29 = sshll.u32 %s2575_s24, 4  ;;  %s2352_s29 = int_to_ptr.vmem [resolvable:$false] %s2351_s29 }
  0x2b   : > { %s2353_s30 = scalar_lea.vmem %s2352_s29, 512  ;;  %p2354_p3 = scmp.lt.s32.totalorder %s2700_s14, %s2352_s29 }
  0x2c   : > { %p2349_p1 = pnand %p2347_p0, %p2710_p7  ;;  %p2355_p4 = scmp.lt.s32.totalorder %s2353_s30, %s2346_s25 }
  0x2e   : > { %p2350_p2 = pneg %p2349_p1  ;;  %p2356_p6 = por %p2355_p4, %p2354_p3 }
  0x30   : > { %p2357_p8 = pnand %p2356_p6, %p2350_p2 }
  0x32   : > { %2360 = shalt.err (!%p2357_p8)
}
  0x33   : > { %s3178_s27 = smov 64   ;;  %s2577_s28 = smov 4  }
  0x34   : > { %2269 = dma.hbm_to_vmem [thread:$0]  (!%p2696_p5), %s2692_s12, 256, %s2700_s14, %s2704_s16, %s3178_s27, %s3178_s27, %s2577_s28  }
  0x35   : > { %s3194_s24 = sshll.u32 %s2573_s20, 8  ;;  %s3195_s6 = sld [smem:[#allocation25_spill]] }
  0x36   : > { %s3196_s29 = sshll.u32 %s2683_s26, 4  ;;  %s3197_s19 = sand.u32 1, %s2573_s20  }
  0x37   : > { %s427_s30 = scalar_lea.vmem [#allocation8], %s3196_s29  ;;  %s2746_s21 = scalar_lea.sflag [#allocation9], %s3197_s19 }
  0x38   : > { %s435_s1 = sshll.u32 %s427_s30, 4  ;;  %s436_s1 = int_to_ptr.vmem [resolvable:$true] %s435_s1 }
  0x3b   : > { %s2740_s13 = scalar_lea.hbm %s3195_s6, %s3194_s24  ;;  %s2366_s28 = scalar_lea.hbm %s3195_s6, 512 }
  0x3c   : > { %s2361_s11 = scalar_lea.hbm %s2740_s13, 256  ;;  %p2367_p12 = scmp.lt.s32.totalorder %s2740_s13, %s3195_s6 }
  0x3d   : > { %p2362_p9 = scmp.ne.s32.totalorder %s2740_s13, %s2361_s11  ;;  %p2368_p13 = scmp.lt.s32.totalorder %s2366_s28, %s2361_s11 }
  0x3f   : > { %p2364_p10 = pnand %p2362_p9, %p2710_p7  ;;  %p2369_p0 = por %p2368_p13, %p2367_p12 }
  0x41   : > { %p2365_p11 = pneg %p2364_p10 }
  0x43   : > { %p2370_p1 = pnand %p2369_p0, %p2365_p11 }
  0x45   : > { %2373 = shalt.err (!%p2370_p1)
}
  0x46   : > { %s2374_s25 = scalar_lea.vmem %s436_s1, 256  ;;  %s2578_s19 = smov [#allocation8]  }
  0x47   : > { %p2375_p2 = scmp.ne.s32.totalorder %s436_s1, %s2374_s25  ;;  %s2379_s29 = sshll.u32 %s2578_s19, 4  ;;  %s2380_s29 = int_to_ptr.vmem [resolvable:$false] %s2379_s29 }
  0x48   : > { %s2381_s30 = scalar_lea.vmem %s2380_s29, 512  ;;  %p2382_p6 = scmp.lt.s32.totalorder %s436_s1, %s2380_s29 }
  0x49   : > { %p2377_p3 = pnand %p2375_p2, %p2710_p7  ;;  %p2383_p8 = scmp.lt.s32.totalorder %s2381_s30, %s2374_s25 }
  0x4b   : > { %p2378_p4 = pneg %p2377_p3  ;;  %p2384_p9 = por %p2383_p8, %p2382_p6 }
  0x4d   : > { %p2385_p10 = pnand %p2384_p9, %p2378_p4 }
  0x4f   : > { %2388 = shalt.err (!%p2385_p10)
}
  0x50   : > { %2275 = dma.hbm_to_vmem [thread:$0]  (!%p2696_p5), %s2740_s13, 256, %s436_s1, %s2746_s21  }
  0x51   : > { %s2766_s11 = sadd.s32 4294967295, %s2573_s20   ;;  %p73_p11 = scmp.ne.s32.totalorder %s2565_s18, %s2561_s17 }
  0x52   : > { %p3175_p12 = scmp.eq.s32.totalorder %s2766_s11, 0  ;;  %p2121_p13 = scmp.ge.s32.totalorder %s2573_s20, 1 }
  0x53   : > { %p339_p0 = scmp.lt.s32.totalorder %s2573_s20, 3  ;;  %s2579_s13 = smov [#allocation2]  }
  0x54   : > { %p2775_p1 = por %p3175_p12, %p73_p11  ;;  %s352_s14 = sshll.u32 %s2579_s13, 4  ;;  %s353_s14 = int_to_ptr.vmem [resolvable:$true] %s352_s14 }
  0x55   : > { %p2780_p3 = pnand %p2121_p13, %p339_p0  ;;  %s3176_s28 = sshll.u32 %s2683_s26, 8 }
  0x56   : > { %s3198_s12 = scalar_select %p2775_p1, 1, 0 }
  0x57   : > { %s3199_s1 = scalar_select %p2780_p3, 1, 0 }
  0x58   : > { %p2262_p4 = pneg %p2780_p3  ;;  %s3177_s17 = sshll.u32 %s2573_s20, 12 }
  0x59   : > { %s3201_s5 = sld [smem:[#allocation24_spill]]  ;;  %s406_s29 = scalar_lea.vmem [#allocation7], %s3176_s28 }
  0x5a   : > { %p2790_p6 = pnand %p2262_p4, %p3175_p12  ;;  %s413_s30 = sshll.u32 %s406_s29, 4  ;;  %s2803_s30 = int_to_ptr.vmem [resolvable:$true] %s413_s30 }
  0x5b   : > { %s2400_s13 = scalar_lea.vmem %s353_s14, 128  ;;  %p2408_p13 = scmp.lt.s32.totalorder %s353_s14, %s353_s14 }
  0x5c   : > { %p2391_p8 = pneg %p2790_p6  ;;  %p2401_p9 = scmp.ne.s32.totalorder %s353_s14, %s2400_s13 }
  0x5d   : > { %p2409_p0 = scmp.lt.s32.totalorder %s2400_s13, %s2400_s13 }
  0x5e   : > { %p2403_p10 = pnand %p2401_p9, %p2391_p8 }
  0x5f   : > { %s2799_s19 = scalar_lea.hbm %s3201_s5, %s3177_s17  ;;  %p2410_p4 = por %p2409_p0, %p2408_p13 }
  0x60   : > { %p2404_p11 = pneg %p2403_p10 }
  0x62   : > { %p2411_p2 = pnand %p2410_p4, %p2404_p11 }
  0x64   : > { %2414 = shalt.err (!%p2411_p2)
}
  0x65   : > { %s3202_s0 = sld [smem:[#allocation22_spill]]  ;;  %s2415_s29 = scalar_lea.hbm %s2799_s19, 4096 }
  0x66   : > { %p2416_p12 = scmp.ne.s32.totalorder %s2799_s19, %s2415_s29  ;;  %s2420_s17 = scalar_lea.hbm %s3201_s5, 8192 }
  0x67   : > { %p2421_p2 = scmp.lt.s32.totalorder %s2799_s19, %s3201_s5  ;;  %p2422_p10 = scmp.lt.s32.totalorder %s2420_s17, %s2415_s29 }
  0x68   : > { %p2418_p8 = pnand %p2416_p12, %p2710_p7 }
  0x69   : > { %p2423_p11 = por %p2422_p10, %p2421_p2 }
  0x6a   : > { %p2419_p9 = pneg %p2418_p8 }
  0x6b   : > { %2265 = dma.hbm_to_vmem [thread:$0]  (!%p2790_p6), %s3202_s0, 128, %s353_s14, [#allocation3]  }
  0x6c   : > { %p2424_p13 = pnand %p2423_p11, %p2419_p9 }
  0x6e   : > { %2427 = shalt.err (!%p2424_p13)
}
  0x6f   : > { %s2428_s14 = scalar_lea.vmem %s2803_s30, 4096  ;;  %s2580_s24 = smov [#allocation7]  }
  0x70   : > { %p2429_p6 = scmp.ne.s32.totalorder %s2803_s30, %s2428_s14  ;;  %s2433_s28 = sshll.u32 %s2580_s24, 4  ;;  %s2434_s28 = int_to_ptr.vmem [resolvable:$false] %s2433_s28 }
  0x71   : > { %s2435_s22 = scalar_lea.vmem %s2434_s28, 8192  ;;  %p2436_p4 = scmp.lt.s32.totalorder %s2803_s30, %s2434_s28 }
  0x72   : > { %p2431_p12 = pnand %p2429_p6, %p2710_p7  ;;  %p2437_p8 = scmp.lt.s32.totalorder %s2435_s22, %s2428_s14 }
  0x74   : > { %p2432_p0 = pneg %p2431_p12  ;;  %p2438_p1 = por %p2437_p8, %p2436_p4 }
  0x76   : > { %p2439_p3 = pnand %p2438_p1, %p2432_p0 }
  0x78   : > { %2442 = shalt.err (!%p2439_p3)
}
  0x79   : > { %s2581_s6 = smov 1024   ;;  %s3203_s27 = smov 64  }
  0x7a   : > { %2272 = dma.hbm_to_vmem [thread:$0]  (!%p2696_p5), %s2799_s19, 4096, %s2803_s30, %s2704_s16, %s2581_s6, %s2581_s6, %s3203_s27  }
  0x7b   : > { %s3204_s17 = sshll.u32 %s2573_s20, 12  ;;  %s3205_s7 = sld [smem:[#allocation26_spill]] }
  0x7c   : > { %s3206_s14 = sshll.u32 %s2683_s26, 8 }
  0x7d   : > { %s446_s24 = scalar_lea.vmem [#allocation10], %s3206_s14 }
  0x7e   : > { %s453_s28 = sshll.u32 %s446_s24, 4  ;;  %s454_s28 = int_to_ptr.vmem [resolvable:$true] %s453_s28 }
  0x81   : > { %s2841_s13 = scalar_lea.hbm %s3205_s7, %s3204_s17  ;;  %s2448_s19 = scalar_lea.hbm %s3205_s7, 8192 }
  0x82   : > { %s2443_s22 = scalar_lea.hbm %s2841_s13, 4096  ;;  %p2449_p2 = scmp.lt.s32.totalorder %s2841_s13, %s3205_s7 }
  0x83   : > { %p2444_p1 = scmp.ne.s32.totalorder %s2841_s13, %s2443_s22  ;;  %p2450_p10 = scmp.lt.s32.totalorder %s2448_s19, %s2443_s22 }
  0x85   : > { %p2446_p3 = pnand %p2444_p1, %p2710_p7  ;;  %p2451_p11 = por %p2450_p10, %p2449_p2 }
  0x87   : > { %p2447_p9 = pneg %p2446_p3 }
  0x89   : > { %p2452_p13 = pnand %p2451_p11, %p2447_p9 }
  0x8b   : > { %2455 = shalt.err (!%p2452_p13)
}
  0x8c   : > { %s2456_s17 = scalar_lea.vmem %s454_s28, 4096  ;;  %s2582_s29 = smov [#allocation10]  }
  0x8d   : > { %p2457_p6 = scmp.ne.s32.totalorder %s454_s28, %s2456_s17  ;;  %s2461_s14 = sshll.u32 %s2582_s29, 4  ;;  %s2462_s14 = int_to_ptr.vmem [resolvable:$false] %s2461_s14 }
  0x8e   : > { %s2463_s24 = scalar_lea.vmem %s2462_s14, 8192  ;;  %p2464_p4 = scmp.lt.s32.totalorder %s454_s28, %s2462_s14 }
  0x8f   : > { %p2459_p12 = pnand %p2457_p6, %p2710_p7  ;;  %p2465_p8 = scmp.lt.s32.totalorder %s2463_s24, %s2456_s17 }
  0x91   : > { %p2460_p0 = pneg %p2459_p12  ;;  %p2466_p1 = por %p2465_p8, %p2464_p4 }
  0x93   : > { %p2467_p3 = pnand %p2466_p1, %p2460_p0 }
  0x95   : > { %2470 = shalt.err (!%p2467_p3)
}
  0x96   : > { %2278 = dma.hbm_to_vmem [thread:$0]  (!%p2696_p5), %s2841_s13, 4096, %s454_s28, %s2746_s21, %s2581_s6, %s2581_s6, %s3203_s27  }
  0x97   : > { %s2136_s0 = sshll.u32 %s2573_s20, 4  ;;  %s466_s22 = scalar_lea.vmem [#allocation11], %s2683_s26 }
  0x98   : > { %s473_s16 = sshll.u32 %s466_s22, 4  ;;  %s471_s25 = scalar_lea.hbm %s3165_s8, %s2136_s0  ;;  %s474_s16 = int_to_ptr.vmem [resolvable:$true] %s473_s16 }
  0x99   : > { %s464_s17 = scalar_lea.sflag [#allocation12], %s2683_s26  ;;  %s2471_s29 = scalar_lea.hbm %s471_s25, 16 }
  0x9a   : > { %p2472_p9 = scmp.ne.s32.totalorder %s471_s25, %s2471_s29  ;;  %s2476_s5 = scalar_lea.hbm %s3165_s8, 32 }
  0x9b   : > { %p2477_p11 = scmp.lt.s32.totalorder %s471_s25, %s3165_s8  ;;  %p2478_p13 = scmp.lt.s32.totalorder %s2476_s5, %s2471_s29 }
  0x9c   : > { %p2474_p2 = pnand %p2472_p9, %p2710_p7 }
  0x9d   : > { %p2479_p6 = por %p2478_p13, %p2477_p11 }
  0x9e   : > { %p2475_p10 = pneg %p2474_p2 }
  0xa0   : > { %p2480_p12 = pnand %p2479_p6, %p2475_p10 }
  0xa2   : > { %2483 = shalt.err (!%p2480_p12)
}
  0xa3   : > { %s2484_s20 = scalar_lea.vmem %s474_s16, 16  ;;  %s2583_s26 = smov [#allocation11]  }
  0xa4   : > { %p2485_p0 = scmp.ne.s32.totalorder %s474_s16, %s2484_s20  ;;  %s2489_s6 = sshll.u32 %s2583_s26, 4  ;;  %s2490_s6 = int_to_ptr.vmem [resolvable:$false] %s2489_s6 }
  0xa5   : > { %s2491_s27 = scalar_lea.vmem %s2490_s6, 32  ;;  %p2492_p1 = scmp.lt.s32.totalorder %s474_s16, %s2490_s6 }
  0xa6   : > { %p2487_p4 = pnand %p2485_p0, %p2710_p7  ;;  %p2493_p3 = scmp.lt.s32.totalorder %s2491_s27, %s2484_s20 }
  0xa8   : > { %p2488_p8 = pneg %p2487_p4  ;;  %p2494_p9 = por %p2493_p3, %p2492_p1 }
  0xaa   : > { %p2495_p2 = pnand %p2494_p9, %p2488_p8 }
  0xac   : > { %2498 = shalt.err (!%p2495_p2)
}
  0xad   : > { %2281 = dma.hbm_to_vmem [thread:$0]  (!%p2696_p5), %s471_s25, 16, %s474_s16, %s464_s17  }
  0xae   : > { %p3207_p10 = scmp.ne.s32.totalorder %s3199_s1, 0 }
  0xaf   : > { %p3208_p11 = scmp.eq.s32.totalorder (!%p3207_p10), %s2766_s11, 0 }
  0xb0   : > { %494 = sbr.rel (%p3207_p10) target bundleno = 1209 (0x4b9), region = 64 }
  0xb5   : > { %2540 = dma.done.wait (%p3208_p11), [#allocation3], 128   ;;  %p3209_p7 = pmov %p3208_p11 }
  0xb6   : > { %s500_s5 = sand.u32 1, %s2766_s11   ;;  %s2891_s7 = sand.u32 1, %s2565_s18  }
  0xb7   : > { %2542 = vsyncadd (%p3209_p7), [#allocation3], 4294967168  ;;  %s2139_s23 = sshll.u32 %s2891_s7, 4  ;;  %s501_s13 = scalar_lea.sflag [#allocation6], %s500_s5 }
  0xb8   : > { %s504_s15 = scalar_lea.vmem [#allocation5], %s2139_s23  ;;  %p3210_p5 = scmp.ne.s32.totalorder %s3198_s12, 0 }
  0xba   : > { %2544 = dma.done.wait (%p3210_p5), %s501_s13, 4352  }
  0xbb   : > { %2546 = vsyncadd (%p3210_p5), %s501_s13, 4294962944  ;;  %s2140_s1 = sshll.u32 %s2891_s7, 8  ;;  %s519_s0 = scalar_lea.sflag [#allocation9], %s500_s5 }
  0xbc   : > { %s2899_s28 = scalar_lea.vmem [#allocation7], %s2140_s1  ;;  %s2901_s22 = scalar_lea.vmem [#allocation8], %s2139_s23 }
  0xbd   : > { %2548 = dma.done.wait (%p3210_p5), %s519_s0, 4352  }
  0xbe   : > { %2550 = vsyncadd (%p3210_p5), %s519_s0, 4294962944  ;;  %s2907_s16 = scalar_lea.vmem [#allocation10], %s2140_s1  ;;  %s537_s19 = scalar_lea.sflag [#allocation12], %s2891_s7 }
  0xbf   : > { %s539_s30 = scalar_lea.vmem [#allocation11], %s2891_s7 }
  0xc0   : > { %2552 = dma.done.wait (%p3210_p5), %s537_s19, 16  }
  0xc1   : > { %2554 = vsyncadd (%p3210_p5), %s537_s19, 4294967280  ;;  %p607_p13 = scmp.lt.s32.totalorder %s2766_s11, 1  ;;  %p3211_p6 = scmp.ne.s32.totalorder %s2766_s11, 0 }
  0xc3   : > { %s2917_s25 = scalar_select %p607_p13, %s2766_s11, 1 }
  0xc4   : > { %626 = sbr.rel (%p3211_p6) target bundleno = 203 (0xcb), region = 92 }
  0xc5   : > { %s609_s14 = scalar_lea.vmem %s3159_s2, %s2917_s25  ;;  %s612_s20 = scalar_lea.vmem %s3160_s3, %s2917_s25 }
  0xc6   : > { %s615_s6 = scalar_lea.vmem %s3161_s4, %s2917_s25  ;;  %s618_s23 = scalar_lea.vmem %s3166_s9, %s2917_s25 }
  0xc7   : > { %s621_s0 = scalar_lea.vmem %s3167_s10, %s2917_s25 }
  0xc9   : > { %v627_v0 = vld [vmem:[#allocation2] sm:$0xff]  ;;  %vm628_vm0 = vcmask 261120  }
  0xca   : > { %629 = vst.msk [vmem:[#allocation13] sm:$0xff] %vm628_vm0, %v627_v0 }
  0xcb PF: > { %v2327_v1 = vld [vmem:[%s504_s15 + $0x8] sm:$0xff]   ;;  %v2584_v2 = vmov 0.0   ;;  %v2328_v3 = vld [vmem:[%s504_s15] sm:$0xff]   ;;  %vm2585_vm1 = vmmov 0   ;;  %vm655_vm2 = vcmask 261120   ;;  %v2586_v37 = vmov 0  }
  0xcc   : > { %2236 = vmatprep.subr.bf16.mxu0 %v2584_v2  ;;  %2240 = vmatprep.mubr.msk.bf16.mxu0 %vm2585_vm1, %v2584_v2  ;;  %v2144_v6 = vld [vmem:[%s609_s14] ss:$0 sm:$0xff]  ;;  %v748_v16 = vld [vmem:[%s2899_s28 + $0x80] sm:$0xff]  ;;  %v749_v18 = vld [vmem:[%s2899_s28 + $0x88] sm:$0xff]  ;;  %p2285_p12 = scmp.eq.s32.totalorder %s2766_s11, 1 }
  0xcd   : > { %2237 = vmatpush3.bf16.msra.mxu0 %v2327_v1  ;;  %v756_v17 = vld [vmem:[%s2899_s28 + $0xc0] sm:$0xff]  ;;  %v757_v20 = vld [vmem:[%s2899_s28 + $0xc8] sm:$0xff]  ;;  %v750_v32 = vld [vmem:[%s2899_s28 + $0x90] sm:$0xff]  ;;  %1043 = vmatprep.mubr.bf16.mxu1 %v2586_v37 }
  0xce   : > { %2238 = vmatprep.subr.bf16.mxu0 %v2584_v2  ;;  %v2167_v19 = vcombine.high %v748_v16, %v756_v17  ;;  %v2168_v21 = vcombine.low %v749_v18, %v757_v20  ;;  %v2169_v22 = vcombine.high %v749_v18, %v757_v20  ;;  %v2166_v23 = vcombine.low %v748_v16, %v756_v17  ;;  %v732_v24 = vld [vmem:[%s2899_s28] sm:$0xff]  ;;  %v733_v26 = vld [vmem:[%s2899_s28 + $0x8] sm:$0xff]  ;;  %v758_v33 = vld [vmem:[%s2899_s28 + $0xd0] sm:$0xff] }
  0xcf   : > { %v740_v25 = vld [vmem:[%s2899_s28 + $0x40] sm:$0xff]  ;;  %v741_v28 = vld [vmem:[%s2899_s28 + $0x48] sm:$0xff]  ;;  %v751_v34 = vld [vmem:[%s2899_s28 + $0x98] sm:$0xff]  ;;  %v2171_v35 = vcombine.high %v750_v32, %v758_v33  ;;  %v2170_v38 = vcombine.low %v750_v32, %v758_v33 }
  0xd0   : > { %1023 = vmatprep.subr.bf16.mxu1 %v2167_v19  ;;  %v2151_v27 = vcombine.high %v732_v24, %v740_v25  ;;  %v2152_v29 = vcombine.low %v733_v26, %v741_v28  ;;  %v2153_v30 = vcombine.high %v733_v26, %v741_v28  ;;  %v2150_v31 = vcombine.low %v732_v24, %v740_v25  ;;  %v759_v36 = vld [vmem:[%s2899_s28 + $0xd8] sm:$0xff]  ;;  %v734_v54 = vld [vmem:[%s2899_s28 + $0x10] sm:$0xff]  ;;  %v752_v62 = vld [vmem:[%s2899_s28 + $0xa0] sm:$0xff] }
  0xd1   : > { %v630_v4 = vld [vmem:[#allocation13] sm:$0xff]  ;;  %2239 = vmatpush3.bf16.msra.mxu0 %v2328_v3  ;;  %1024 = vmatpush1.bf16.msra.mxu1 %v2166_v23  ;;  %v2172_v39 = vcombine.low %v751_v34, %v759_v36  ;;  %v2173_v40 = vcombine.high %v751_v34, %v759_v36  ;;  %v2148_v50 = vld [vmem:[%s612_s20] ss:$0 sm:$0xff]  ;;  %v742_v55 = vld [vmem:[%s2899_s28 + $0x50] sm:$0xff] }
  0xd2   : > { %v631_v5 = vpack.c.bf16 %v630_v4, %v630_v4  ;;  %1064 = vmatprep.subr.bf16.mxu0 %v2169_v22  ;;  %1025 = vmatprep.subr.bf16.mxu1 %v2151_v27  ;;  %v2149_v52 = vld [vmem:[%s615_s6] ss:$0 sm:$0xff]  ;;  %v2155_v60 = vcombine.high %v734_v54, %v742_v55  ;;  %v760_v63 = vld [vmem:[%s2899_s28 + $0xe0] sm:$0xff]  ;;  %v753_v0 = vld [vmem:[%s2899_s28 + $0xa8] sm:$0xff]  ;;  %v2154_v2 = vcombine.low %v734_v54, %v742_v55 }
  0xd3   : > { %v735_v56 = vld [vmem:[%s2899_s28 + $0x18] sm:$0xff]  ;;  %v761_v1 = vld [vmem:[%s2899_s28 + $0xe8] sm:$0xff]  ;;  %v738_v22 = vld [vmem:[%s2899_s28 + $0x30] sm:$0xff] }
  0xd4   : > { %2241 = vmatmul.mubr.msk.bf16.vlgmr.msra.gmra.mxu0 %vm655_vm2, %v631_v5  ;;  %v743_v57 = vld [vmem:[%s2899_s28 + $0x58] sm:$0xff]  ;;  %v2177_v5 = vcombine.high %v753_v0, %v761_v1  ;;  %v746_v23 = vld [vmem:[%s2899_s28 + $0x70] sm:$0xff]  ;;  %v1388_v32 = vld [vmem:[%s2907_s16 + $0x88] sm:$0xff] }
  0xd5   : > { %1065 = vmatpush1.bf16.msra.mxu0 %v2168_v21  ;;  %1026 = vmatpush1.bf16.msra.mxu1 %v2150_v31  ;;  %v2157_v61 = vcombine.high %v735_v56, %v743_v57  ;;  %v2156_v3 = vcombine.low %v735_v56, %v743_v57  ;;  %v755_v16 = vld [vmem:[%s2899_s28 + $0xb8] sm:$0xff]  ;;  %v2163_v28 = vcombine.high %v738_v22, %v746_v23  ;;  %v1395_v31 = vld [vmem:[%s2907_s16 + $0xc0] sm:$0xff]  ;;  %v1396_v33 = vld [vmem:[%s2907_s16 + $0xc8] sm:$0xff]  ;;  %v768_v56 = vlaneseq }
  0xd6   : > { %1066 = vmatprep.subr.bf16.mxu0 %v2153_v30  ;;  %1084 = vmatprep.mubr.bf16.mxu0 %v2586_v37  ;;  %v763_v17 = vld [vmem:[%s2899_s28 + $0xf8] sm:$0xff]  ;;  %v1387_v30 = vld [vmem:[%s2907_s16 + $0x80] sm:$0xff]  ;;  %v2162_v34 = vcombine.low %v738_v22, %v746_v23 }
  0xd7   : > { %1105 = vmatprep.subr.bf16.mxu1 %v2171_v35  ;;  %v2181_v21 = vcombine.high %v755_v16, %v763_v17  ;;  %v739_v24 = vld [vmem:[%s2899_s28 + $0x38] sm:$0xff]  ;;  %v2180_v27 = vcombine.low %v755_v16, %v763_v17  ;;  %v2208_v36 = vcombine.high %v1387_v30, %v1395_v31  ;;  %v3032_v57 = vshrl.u32 %v768_v56, 7 }
  0xd8   : > { %v747_v25 = vld [vmem:[%s2899_s28 + $0x78] sm:$0xff] }
  0xd9   : > { %1067 = vmatpush1.bf16.msra.mxu0 %v2152_v29  ;;  %v2165_v29 = vcombine.high %v739_v24, %v747_v25  ;;  %v2164_v35 = vcombine.low %v739_v24, %v747_v25  ;;  %v1374_v22 = vld [vmem:[%s2907_s16 + $0x18] sm:$0xff] }
  0xda   : > { %1146 = vmatprep.subr.bf16.mxu0 %v2173_v40  ;;  %v2209_v40 = vcombine.low %v1388_v32, %v1396_v33  ;;  %v1382_v23 = vld [vmem:[%s2907_s16 + $0x58] sm:$0xff] }
  0xdb   : > { %v2197_v56 = vcombine.low %v1374_v22, %v1382_v23 }
 0x194   : > { %v693_v7 = vpop.f32.mrf.mxu0 }
 0x195   : > { %v694_v8 = vadd.f32 %v2144_v6, %v693_v7  ;;  %v736_v6 = vld [vmem:[%s2899_s28 + $0x20] sm:$0xff] }
 0x196   : > { %v2242_v9 = vpop.f32.mrf.mxu0  ;;  %v744_v7 = vld [vmem:[%s2899_s28 + $0x60] sm:$0xff] }
 0x197   : > { %v699_v10 = vadd.f32 %v694_v8, %v630_v4  ;;  %v2175_v4 = vcombine.high %v752_v62, %v760_v63  ;;  %v737_v8 = vld [vmem:[%s2899_s28 + $0x28] sm:$0xff]  ;;  %v2158_v18 = vcombine.low %v736_v6, %v744_v7 }
 0x198   : > { %v696_v11 = vpop.f32.mrf.mxu0  ;;  %v745_v9 = vld [vmem:[%s2899_s28 + $0x68] sm:$0xff] }
 0x199   : > { %v702_v12 = vsel %vm655_vm2, %v699_v10, 0.0  ;;  %v705_v13 = vmul.f32 %v699_v10, %v699_v10  ;;  %v2176_v11 = vcombine.low %v753_v0, %v761_v1  ;;  %v2160_v19 = vcombine.low %v737_v8, %v745_v9 }
 0x19a   : > { %703 = vadd.xlane.f32.xlu0 %v702_v12  ;;  %v2243_v14 = vpop.f32.mrf.mxu0  ;;  %v2159_v12 = vcombine.high %v736_v6, %v744_v7 }
 0x19b   : > { %v706_v15 = vsel %vm655_vm2, %v705_v13, 0.0  ;;  %v2161_v13 = vcombine.high %v737_v8, %v745_v9  ;;  %v754_v14 = vld [vmem:[%s2899_s28 + $0xb0] sm:$0xff] }
 0x19e   : > { %707 = vadd.xlane.f32.xlu0 %v706_v15  ;;  %v762_v15 = vld [vmem:[%s2899_s28 + $0xf0] sm:$0xff] }
 0x19f   : > { %v2179_v20 = vcombine.high %v754_v14, %v762_v15  ;;  %v2178_v26 = vcombine.low %v754_v14, %v762_v15 }
 0x223   : > { %v704_v41 = vpop.xlane.xlu0 %703 }
 0x224   : > { %v709_v42 = vmul.f32 0.03125, %v704_v41  ;;  %v1371_v41 = vld [vmem:[%s2907_s16] sm:$0xff] }
 0x226   : > { %v711_v44 = vmul.f32 %v709_v42, %v709_v42  ;;  %v713_v48 = vsub.f32 %v699_v10, %v709_v42  ;;  %v2174_v10 = vcombine.low %v752_v62, %v760_v63  ;;  %v1372_v42 = vld [vmem:[%s2907_s16 + $0x8] sm:$0xff]  ;;  %v774_v62 = vsub.s32 1, %v3032_v57 }
 0x227   : > { %v708_v43 = vpop.xlane.xlu0 %707  ;;  %v782_v63 = vsub.s32 3, %v3032_v57 }
 0x228   : > { %v710_v45 = vmul.f32 0.03125, %v708_v43 }
 0x22a   : > { %v712_v46 = vsub.f32 %v710_v45, %v711_v44  ;;  %v1380_v44 = vld [vmem:[%s2907_s16 + $0x48] sm:$0xff] }
 0x22c   : > { %v714_v47 = vadd.f32 1e-05, %v712_v46  ;;  %v2193_v46 = vcombine.low %v1372_v42, %v1380_v44 }
 0x22e   : > { %2329 = vrsqrt.f32 %v714_v47  ;;  %v2194_v47 = vcombine.high %v1372_v42, %v1380_v44 }
 0x23b   : > { %v2330_v49 = vpop.eup %2329 }
 0x23c   : > { %v716_v51 = vmul.f32 %v2330_v49, %v713_v48  ;;  %v3025_v48 = vld [vmem:[%s2907_s16 + $0x90] sm:$0xff] }
 0x23d   : > { %v1397_v49 = vld [vmem:[%s2907_s16 + $0xd0] sm:$0xff] }
 0x23e   : > { %v723_v53 = vmul.f32 %v2148_v50, %v716_v51  ;;  %v1390_v50 = vld [vmem:[%s2907_s16 + $0x98] sm:$0xff]  ;;  %v2212_v51 = vcombine.high %v3025_v48, %v1397_v49 }
 0x240   : > { %v2972_v58 = vadd.f32 %v2149_v52, %v723_v53  ;;  %v1398_v52 = vld [vmem:[%s2907_s16 + $0xd8] sm:$0xff]  ;;  %v2211_v53 = vcombine.low %v3025_v48, %v1397_v49  ;;  %v1399_v49 = vld [vmem:[%s2907_s16 + $0xe0] sm:$0xff] }
 0x241   : > { %v2213_v54 = vcombine.low %v1390_v50, %v1398_v52  ;;  %v2214_v55 = vcombine.high %v1390_v50, %v1398_v52  ;;  %v1392_v50 = vld [vmem:[%s2907_s16 + $0xa8] sm:$0xff] }
 0x242   : > { %v2976_v59 = vpack.c.bf16 %v2972_v58, %v2972_v58 }
 0x244   : > { %2182 = vmatmul.mubr.msk.bf16.vlgmr.msra.gmra.mxu1 %vm655_vm2, %v2976_v59  ;;  %2183 = vmatmul.mubr.msk.bf16.vlgmr.msra.gmra.mxu0 %vm655_vm2, %v2976_v59 }
 0x245   : > { %1106 = vmatpush1.bf16.msra.mxu1 %v2170_v38  ;;  %1147 = vmatpush1.bf16.msra.mxu0 %v2172_v39  ;;  %v2210_v38 = vcombine.high %v1388_v32, %v1396_v33  ;;  %v2207_v39 = vcombine.low %v1387_v30, %v1395_v31 }
 0x246   : > { %1107 = vmatprep.subr.bf16.mxu1 %v2155_v60  ;;  %1148 = vmatprep.subr.bf16.mxu0 %v2157_v61  ;;  %v778_v60 = vsub.s32 2, %v3032_v57  ;;  %v764_v61 = vld [vmem:[%s2901_s22] sm:$0xff] }
 0x247   : > { %1125 = vmatprep.mubr.bf16.mxu1 %v2586_v37  ;;  %1166 = vmatprep.mubr.bf16.mxu0 %v2586_v37 }
 0x248   : > { %v779_v1 = vrot.slane %v764_v61, %v778_v60 }
 0x249   : > { %1108 = vmatpush1.bf16.msra.mxu1 %v2154_v2  ;;  %1149 = vmatpush1.bf16.msra.mxu0 %v2156_v3  ;;  %v775_v2 = vrot.slane %v764_v61, %v774_v62  ;;  %v783_v3 = vrot.slane %v764_v61, %v782_v63 }
 0x24a   : > { %1187 = vmatprep.subr.bf16.mxu1 %v2175_v4  ;;  %1228 = vmatprep.subr.bf16.mxu0 %v2177_v5 }
 0x24c   : > { %2184 = vmatmul.mubr.msk.bf16.vlgmr.msra.gmra.mxu1 %vm655_vm2, %v2976_v59  ;;  %2185 = vmatmul.mubr.msk.bf16.vlgmr.msra.gmra.mxu0 %vm655_vm2, %v2976_v59 }
 0x24d   : > { %1188 = vmatpush1.bf16.msra.mxu1 %v2174_v10  ;;  %1229 = vmatpush1.bf16.msra.mxu0 %v2176_v11 }
 0x24e   : > { %1189 = vmatprep.subr.bf16.mxu1 %v2159_v12  ;;  %1230 = vmatprep.subr.bf16.mxu0 %v2161_v13  ;;  %v790_v12 = vsub.s32 5, %v3032_v57  ;;  %v798_v13 = vsub.s32 7, %v3032_v57 }
 0x24f   : > { %1207 = vmatprep.mubr.bf16.mxu1 %v2586_v37  ;;  %1248 = vmatprep.mubr.bf16.mxu0 %v2586_v37 }
 0x250   : > { %v791_v30 = vrot.slane %v764_v61, %v790_v12  ;;  %v799_v31 = vrot.slane %v764_v61, %v798_v13 }
 0x251   : > { %1190 = vmatpush1.bf16.msra.mxu1 %v2158_v18  ;;  %1231 = vmatpush1.bf16.msra.mxu0 %v2160_v19  ;;  %v3050_v18 = vld [vmem:[%s2907_s16 + $0x10] sm:$0xff] }
 0x252   : > { %1269 = vmatprep.subr.bf16.mxu1 %v2179_v20  ;;  %1310 = vmatprep.subr.bf16.mxu0 %v2181_v21  ;;  %v1381_v21 = vld [vmem:[%s2907_s16 + $0x50] sm:$0xff] }
 0x254   : > { %2186 = vmatmul.mubr.msk.bf16.vlgmr.msra.gmra.mxu1 %vm655_vm2, %v2976_v59  ;;  %2187 = vmatmul.mubr.msk.bf16.vlgmr.msra.gmra.mxu0 %vm655_vm2, %v2976_v59 }
 0x255   : > { %1270 = vmatpush1.bf16.msra.mxu1 %v2178_v26  ;;  %1311 = vmatpush1.bf16.msra.mxu0 %v2180_v27  ;;  %v786_v26 = vsub.s32 4, %v3032_v57  ;;  %v794_v27 = vsub.s32 6, %v3032_v57 }
 0x256   : > { %1271 = vmatprep.subr.bf16.mxu1 %v2163_v28  ;;  %1312 = vmatprep.subr.bf16.mxu0 %v2165_v29 }
 0x257   : > { %1289 = vmatprep.mubr.bf16.mxu1 %v2586_v37  ;;  %1330 = vmatprep.mubr.bf16.mxu0 %v2586_v37  ;;  %v1379_v37 = vld [vmem:[%s2907_s16 + $0x40] sm:$0xff]  ;;  %v787_v42 = vrot.slane %v764_v61, %v786_v26 }
 0x258   : > { %v2192_v43 = vcombine.high %v1371_v41, %v1379_v37  ;;  %v2191_v45 = vcombine.low %v1371_v41, %v1379_v37 }
 0x259   : > { %1272 = vmatpush1.bf16.msra.mxu1 %v2162_v34  ;;  %1313 = vmatpush1.bf16.msra.mxu0 %v2164_v35 }
 0x25a   : > { %1582 = vmatprep.subr.bf16.mxu1 %v2208_v36  ;;  %1622 = vmatprep.subr.bf16.mxu0 %v2210_v38  ;;  %v2196_v36 = vcombine.high %v3050_v18, %v1381_v21  ;;  %v2198_v38 = vcombine.high %v1374_v22, %v1382_v23  ;;  %v1383_v22 = vld [vmem:[%s2907_s16 + $0x60] sm:$0xff]  ;;  %v1376_v23 = vld [vmem:[%s2907_s16 + $0x28] sm:$0xff] }
 0x25c   : > { %2188 = vmatmul.mubr.msk.bf16.vlgmr.msra.gmra.mxu1 %vm655_vm2, %v2976_v59  ;;  %2189 = vmatmul.mubr.msk.bf16.vlgmr.msra.gmra.mxu0 %vm655_vm2, %v2976_v59  ;;  %v770_v59 = vsub.s32 0, %v3032_v57 }
 0x25d   : > { %1583 = vmatpush1.bf16.xpose.msra.mxu1 %v2207_v39  ;;  %1623 = vmatpush1.bf16.xpose.msra.mxu0 %v2209_v40 }
 0x25e   : > { %1584 = vmatprep.subr.bf16.mxu1 %v2192_v43  ;;  %1624 = vmatprep.subr.bf16.mxu0 %v2194_v47  ;;  %v771_v0 = vrot.slane %v764_v61, %v770_v59  ;;  %v795_v43 = vrot.slane %v764_v61, %v794_v27 }
 0x265   : > { %1585 = vmatpush1.bf16.xpose.msra.mxu1 %v2191_v45  ;;  %1625 = vmatpush1.bf16.xpose.msra.mxu0 %v2193_v46  ;;  %v1391_v46 = vld [vmem:[%s2907_s16 + $0xa0] sm:$0xff] }
 0x266   : > { %1662 = vmatprep.subr.bf16.mxu1 %v2212_v51  ;;  %1702 = vmatprep.subr.bf16.mxu0 %v2214_v55  ;;  %v1400_v51 = vld [vmem:[%s2907_s16 + $0xe8] sm:$0xff] }
 0x267   : > { %v3071_v55 = vld [vmem:[%s2901_s22 + $0x8] sm:$0xff] }
 0x268   : > { %v807_v61 = vrot.slane %v3071_v55, %v774_v62 }
 0x304   : > { %v1045_v4 = vpop.f32.mrf.mxu1  ;;  %v1086_v5 = vpop.f32.mrf.mxu0 }
 0x305   : > { %v1046_v6 = vadd.f32 %v1045_v4, %v771_v0  ;;  %v1087_v7 = vadd.f32 %v1086_v5, %v779_v1 }
 0x306   : > { %v1047_v8 = vpop.f32.mrf.mxu1  ;;  %v1088_v9 = vpop.f32.mrf.mxu0 }
 0x307   : > { %v1048_v10 = vadd.f32 %v1047_v8, %v775_v2  ;;  %v1089_v11 = vadd.f32 %v1088_v9, %v783_v3  ;;  %v1339_v14 = vmax.f32 %v1046_v6, 0.0  ;;  %v1341_v15 = vmax.f32 %v1087_v7, 0.0 }
 0x308   : > { %v1049_v16 = vpop.f32.mrf.mxu1  ;;  %v1090_v17 = vpop.f32.mrf.mxu0  ;;  %v815_v2 = vrot.slane %v3071_v55, %v782_v63  ;;  %v2216_v7 = vcombine.high %v1391_v46, %v1399_v49  ;;  %v2218_v8 = vcombine.high %v1392_v50, %v1400_v51 }
 0x309   : > { %v1340_v19 = vmax.f32 %v1048_v10, 0.0  ;;  %v1342_v20 = vmax.f32 %v1089_v11, 0.0  ;;  %v1355_v32 = vpack.c.bf16 %v1339_v14, %v1339_v14  ;;  %v1357_v33 = vpack.c.bf16 %v1341_v15, %v1341_v15 }
 0x30a   : > { %v1050_v24 = vpop.f32.mrf.mxu1  ;;  %v1091_v25 = vpop.f32.mrf.mxu0 }
 0x30b   : > { %v1356_v28 = vpack.c.bf16 %v1340_v19, %v1340_v19  ;;  %v1358_v29 = vpack.c.bf16 %v1342_v20, %v1342_v20  ;;  %v1375_v19 = vld [vmem:[%s2907_s16 + $0x20] sm:$0xff]  ;;  %v1384_v24 = vld [vmem:[%s2907_s16 + $0x68] sm:$0xff] }
 0x30c   : > { %v1127_v34 = vpop.f32.mrf.mxu1  ;;  %v1168_v35 = vpop.f32.mrf.mxu0 }
 0x30d   : > { %1602 = vmatprep.mubr.bf16.mxu1 %v1356_v28  ;;  %1642 = vmatprep.mubr.bf16.mxu0 %v1358_v29  ;;  %v1128_v3 = vadd.f32 %v1127_v34, %v787_v42  ;;  %v1169_v4 = vadd.f32 %v1168_v35, %v795_v43  ;;  %v2215_v28 = vcombine.low %v1391_v46, %v1399_v49  ;;  %v1393_v43 = vld [vmem:[%s2907_s16 + $0xb0] sm:$0xff] }
 0x30e   : > { %v1129_v39 = vpop.f32.mrf.mxu1  ;;  %v1170_v40 = vpop.f32.mrf.mxu0  ;;  %1603 = vmatmul.mubr.bf16.vlgmr.msra.gmra.mxu1 %v1355_v32  ;;  %1643 = vmatmul.mubr.bf16.vlgmr.msra.gmra.mxu0 %v1357_v33  ;;  %v2217_v34 = vcombine.low %v1392_v50, %v1400_v51  ;;  %v2200_v35 = vcombine.high %v1375_v19, %v1383_v22  ;;  %v811_v42 = vrot.slane %v3071_v55, %v778_v60 }
 0x30f   : > { %v1130_v41 = vadd.f32 %v1129_v39, %v791_v30  ;;  %v1171_v37 = vadd.f32 %v1170_v40, %v799_v31  ;;  %1663 = vmatpush1.bf16.xpose.msra.mxu1 %v2211_v53  ;;  %1703 = vmatpush1.bf16.xpose.msra.mxu0 %v2213_v54  ;;  %v2195_v54 = vcombine.low %v3050_v18, %v1381_v21  ;;  %v1343_v62 = vmax.f32 %v1128_v3, 0.0 }
 0x310   : > { %v1131_v44 = vpop.f32.mrf.mxu1  ;;  %v1172_v45 = vpop.f32.mrf.mxu0  ;;  %1664 = vmatprep.subr.bf16.mxu1 %v2196_v36  ;;  %1704 = vmatprep.subr.bf16.mxu0 %v2198_v38  ;;  %v1345_v63 = vmax.f32 %v1169_v4, 0.0  ;;  %v2202_v36 = vcombine.high %v1376_v23, %v1384_v24  ;;  %v803_v40 = vrot.slane %v3071_v55, %v770_v59  ;;  %v1402_v59 = vld [vmem:[%s2907_s16 + $0xf8] sm:$0xff]  ;;  %v831_v49 = vrot.slane %v3071_v55, %v798_v13  ;;  %v1377_v13 = vld [vmem:[%s2907_s16 + $0x30] sm:$0xff] }
 0x311   : > { %v1344_v47 = vmax.f32 %v1130_v41, 0.0  ;;  %v1346_v48 = vmax.f32 %v1171_v37, 0.0  ;;  %v1359_v29 = vpack.c.bf16 %v1343_v62, %v1343_v62  ;;  %v1401_v44 = vld [vmem:[%s2907_s16 + $0xf0] sm:$0xff]  ;;  %v823_v45 = vrot.slane %v3071_v55, %v790_v12 }
 0x312   : > { %v1132_v52 = vpop.f32.mrf.mxu1  ;;  %v1173_v53 = vpop.f32.mrf.mxu0  ;;  %v1361_v30 = vpack.c.bf16 %v1345_v63, %v1345_v63  ;;  %v2199_v50 = vcombine.low %v1375_v19, %v1383_v22  ;;  %v2201_v51 = vcombine.low %v1376_v23, %v1384_v24  ;;  %v2219_v4 = vcombine.low %v1393_v43, %v1401_v44 }
 0x313   : > { %v1360_v0 = vpack.c.bf16 %v1344_v47, %v1344_v47  ;;  %v1362_v1 = vpack.c.bf16 %v1346_v48, %v1346_v48  ;;  %v1394_v48 = vld [vmem:[%s2907_s16 + $0xb8] sm:$0xff]  ;;  %v2220_v52 = vcombine.high %v1393_v43, %v1401_v44  ;;  %v819_v63 = vrot.slane %v3071_v55, %v786_v26 }
 0x314   : > { %v1209_v5 = vpop.f32.mrf.mxu1  ;;  %v1250_v6 = vpop.f32.mrf.mxu0 }
 0x315   : > { %1682 = vmatprep.mubr.bf16.mxu1 %v1360_v0  ;;  %1722 = vmatprep.mubr.bf16.mxu0 %v1362_v1  ;;  %v1210_v60 = vadd.f32 %v1209_v5, %v803_v40  ;;  %v1251_v53 = vadd.f32 %v1250_v6, %v811_v42  ;;  %v1378_v5 = vld [vmem:[%s2907_s16 + $0x38] sm:$0xff] }
 0x316   : > { %v1211_v9 = vpop.f32.mrf.mxu1  ;;  %v1252_v10 = vpop.f32.mrf.mxu0 }
 0x317   : > { %v1212_v11 = vadd.f32 %v1211_v9, %v807_v61  ;;  %v1253_v14 = vadd.f32 %v1252_v10, %v815_v2  ;;  %1665 = vmatpush1.bf16.xpose.msra.mxu1 %v2195_v54  ;;  %1705 = vmatpush1.bf16.xpose.msra.mxu0 %v2197_v56  ;;  %v2222_v54 = vcombine.high %v1394_v48, %v1402_v59  ;;  %v1347_v0 = vmax.f32 %v1210_v60, 0.0  ;;  %v1385_v2 = vld [vmem:[%s2907_s16 + $0x70] sm:$0xff] }
 0x318   : > { %v1213_v15 = vpop.f32.mrf.mxu1  ;;  %v1254_v16 = vpop.f32.mrf.mxu0  ;;  %1742 = vmatprep.subr.bf16.mxu1 %v2216_v7  ;;  %1782 = vmatprep.subr.bf16.mxu0 %v2218_v8  ;;  %v1349_v1 = vmax.f32 %v1251_v53, 0.0  ;;  %v1386_v7 = vld [vmem:[%s2907_s16 + $0x78] sm:$0xff]  ;;  %v2221_v9 = vcombine.low %v1394_v48, %v1402_v59  ;;  %v2204_v10 = vcombine.high %v1377_v13, %v1385_v2 }
 0x319   : > { %v1348_v17 = vmax.f32 %v1212_v11, 0.0  ;;  %v1350_v18 = vmax.f32 %v1253_v14, 0.0  ;;  %v1363_v8 = vpack.c.bf16 %v1347_v0, %v1347_v0  ;;  %v2206_v14 = vcombine.high %v1378_v5, %v1386_v7 }
 0x31a   : > { %v1214_v20 = vpop.f32.mrf.mxu1  ;;  %v1255_v21 = vpop.f32.mrf.mxu0  ;;  %v1365_v6 = vpack.c.bf16 %v1349_v1, %v1349_v1  ;;  %v827_v15 = vrot.slane %v3071_v55, %v794_v27  ;;  %v2203_v16 = vcombine.low %v1377_v13, %v1385_v2 }
 0x31b   : > { %v1364_v25 = vpack.c.bf16 %v1348_v17, %v1348_v17  ;;  %v1366_v31 = vpack.c.bf16 %v1350_v18, %v1350_v18  ;;  %v2205_v18 = vcombine.low %v1378_v5, %v1386_v7 }
 0x31c   : > { %v3084_v32 = vpop.f32.mrf.mxu1  ;;  %v3086_v33 = vpop.f32.mrf.mxu0 }
 0x31d   : > { %v1292_v17 = vadd.f32 %v3084_v32, %v819_v63  ;;  %v1333_v19 = vadd.f32 %v3086_v33, %v827_v15  ;;  %v2223_v63 = vld [vmem:[%s618_s23] ss:$0 sm:$0xff] }
 0x31e   : > { %1683 = vmatmul.mubr.bf16.vlgmr.msra.gmra.mxu1 %v1359_v29  ;;  %1723 = vmatmul.mubr.bf16.vlgmr.msra.gmra.mxu0 %v1361_v30  ;;  %v1293_v38 = vpop.f32.mrf.mxu1  ;;  %v1334_v39 = vpop.f32.mrf.mxu0 }
 0x31f   : > { %1743 = vmatpush1.bf16.xpose.msra.mxu1 %v2215_v28  ;;  %1762 = vmatprep.mubr.bf16.mxu1 %v1364_v25  ;;  %v1294_v56 = vadd.f32 %v1293_v38, %v823_v45  ;;  %v1335_v12 = vadd.f32 %v1334_v39, %v831_v49  ;;  %v1351_v20 = vmax.f32 %v1292_v17, 0.0  ;;  %v1353_v21 = vmax.f32 %v1333_v19, 0.0  ;;  %v2190_v39 = vld [vmem:[%s539_s30] ss:$0 sm:$0xff]  ;;  %s2587_s30 = smov [#allocation13]  }
 0x320   : > { %1783 = vmatpush1.bf16.xpose.msra.mxu0 %v2217_v34  ;;  %1802 = vmatprep.mubr.bf16.mxu0 %v1366_v31  ;;  %v1295_v41 = vpop.f32.mrf.mxu1  ;;  %v1336_v37 = vpop.f32.mrf.mxu0  ;;  %s1930_s14 = sshll.u32 %s2587_s30, 4  ;;  %s1931_s14 = int_to_ptr.vmem [resolvable:$true] %s1930_s14 }
 0x321   : > { %1744 = vmatprep.subr.bf16.mxu1 %v2200_v35  ;;  %1784 = vmatprep.subr.bf16.mxu0 %v2202_v36  ;;  %v1352_v61 = vmax.f32 %v1294_v56, 0.0  ;;  %v1354_v3 = vmax.f32 %v1335_v12, 0.0  ;;  %v1367_v26 = vpack.c.bf16 %v1351_v20, %v1351_v20  ;;  %v1369_v22 = vpack.c.bf16 %v1353_v21, %v1353_v21  ;;  %s2499_s24 = scalar_lea.vmem %s1931_s14, 128  ;;  %p2506_p1 = scmp.lt.s32.totalorder %s1931_s14, %s1931_s14 }
 0x322   : > { %v1296_v46 = vpop.f32.mrf.mxu1  ;;  %v1337_v47 = vpop.f32.mrf.mxu0  ;;  %p2500_p0 = scmp.ne.s32.totalorder %s1931_s14, %s2499_s24  ;;  %p2507_p3 = scmp.lt.s32.totalorder %s2499_s24, %s2499_s24 }
 0x323   : > { %v1368_v11 = vpack.c.bf16 %v1352_v61, %v1352_v61  ;;  %v1370_v62 = vpack.c.bf16 %v1354_v3, %v1354_v3 }
 0x324   : > { %p2501_p4 = pnand %p2500_p0, %p2285_p12  ;;  %p2508_p9 = por %p2507_p3, %p2506_p1 }
 0x326   : > { %p2502_p8 = pneg %p2501_p4 }
 0x327   : > { %1745 = vmatpush1.bf16.xpose.msra.mxu1 %v2199_v50 }
 0x328   : > { %1785 = vmatpush1.bf16.xpose.msra.mxu0 %v2201_v51  ;;  %1822 = vmatprep.subr.bf16.mxu1 %v2220_v52  ;;  %p2509_p2 = pnand %p2508_p9, %p2502_p8 }
 0x329   : > { %1862 = vmatprep.subr.bf16.mxu0 %v2222_v54 }
 0x32e   : > { %1763 = vmatmul.mubr.bf16.vlgmr.msra.gmra.mxu1 %v1363_v8 }
 0x32f   : > { %1803 = vmatmul.mubr.bf16.vlgmr.msra.gmra.mxu0 %v1365_v6  ;;  %1823 = vmatpush1.bf16.xpose.msra.mxu1 %v2219_v4 }
 0x330   : > { %1842 = vmatprep.mubr.bf16.mxu1 %v1368_v11  ;;  %1863 = vmatpush1.bf16.xpose.msra.mxu0 %v2221_v9 }
 0x331   : > { %1882 = vmatprep.mubr.bf16.mxu0 %v1370_v62  ;;  %1824 = vmatprep.subr.bf16.mxu1 %v2204_v10 }
 0x332   : > { %1864 = vmatprep.subr.bf16.mxu0 %v2206_v14 }
 0x337   : > { %1825 = vmatpush1.bf16.xpose.msra.mxu1 %v2203_v16  ;;  %v2224_v16 = vld [vmem:[%s621_s0] ss:$0 sm:$0xff] }
 0x338   : > { %1865 = vmatpush1.bf16.xpose.msra.mxu0 %v2205_v18 }
 0x33e   : > { %1843 = vmatmul.mubr.bf16.vlgmr.msra.gmra.mxu1 %v1367_v26 }
 0x33f   : > { %1883 = vmatmul.mubr.bf16.vlgmr.msra.gmra.mxu0 %v1369_v22 }
 0x3ce   : > { %v1604_v57 = vpop.f32.mrf.mxu1  ;;  %v1644_v27 = vpop.f32.mrf.mxu0 }
 0x3cf   : > { %v1605_v40 = vadd.f32 %v2190_v39, %v1604_v57 }
 0x3d0   : > { %v1606_v55 = vpop.f32.mrf.mxu1  ;;  %v1646_v23 = vpop.f32.mrf.mxu0 }
 0x3d1   : > { %v1645_v43 = vadd.f32 %v1644_v27, %v1605_v40 }
 0x3d2   : > { %v1607_v24 = vpop.f32.mrf.mxu1  ;;  %v1647_v25 = vpop.f32.mrf.mxu0 }
 0x3d4   : > { %v1608_v28 = vpop.f32.mrf.mxu1  ;;  %v1648_v29 = vpop.f32.mrf.mxu0 }
 0x3de   : > { %v1684_v30 = vpop.f32.mrf.mxu1  ;;  %v1724_v31 = vpop.f32.mrf.mxu0 }
 0x3df   : > { %v1685_v46 = vadd.f32 %v1684_v30, %v1645_v43 }
 0x3e0   : > { %v1686_v32 = vpop.f32.mrf.mxu1  ;;  %v1726_v33 = vpop.f32.mrf.mxu0 }
 0x3e1   : > { %v1725_v49 = vadd.f32 %v1724_v31, %v1685_v46 }
 0x3e2   : > { %v1687_v34 = vpop.f32.mrf.mxu1  ;;  %v1727_v35 = vpop.f32.mrf.mxu0 }
 0x3e4   : > { %v1688_v36 = vpop.f32.mrf.mxu1  ;;  %v1728_v38 = vpop.f32.mrf.mxu0 }
 0x3ee   : > { %v1764_v41 = vpop.f32.mrf.mxu1 }
 0x3ef   : > { %v1804_v37 = vpop.f32.mrf.mxu0  ;;  %v1765_v50 = vadd.f32 %v1764_v41, %v1725_v49 }
 0x3f0   : > { %v1766_v42 = vpop.f32.mrf.mxu1 }
 0x3f1   : > { %v1806_v44 = vpop.f32.mrf.mxu0  ;;  %v1805_v60 = vadd.f32 %v1804_v37, %v1765_v50 }
 0x3f2   : > { %v1767_v45 = vpop.f32.mrf.mxu1 }
 0x3f3   : > { %v1807_v47 = vpop.f32.mrf.mxu0 }
 0x3f4   : > { %v1768_v48 = vpop.f32.mrf.mxu1 }
 0x3f5   : > { %v1808_v59 = vpop.f32.mrf.mxu0 }
 0x3fe   : > { %v1844_v51 = vpop.f32.mrf.mxu1 }
 0x3ff   : > { %v1845_v52 = vadd.f32 %v1844_v51, %v1805_v60  ;;  %v1884_v53 = vpop.f32.mrf.mxu0 }
 0x400   : > { %v1846_v54 = vpop.f32.mrf.mxu1 }
 0x401   : > { %v1885_v56 = vadd.f32 %v1884_v53, %v1845_v52  ;;  %v1886_v12 = vpop.f32.mrf.mxu0 }
 0x402   : > { %v1847_v0 = vpop.f32.mrf.mxu1 }
 0x403   : > { %v1890_v1 = vadd.f32 %v1885_v56, %v2972_v58  ;;  %v1887_v61 = vpop.f32.mrf.mxu0 }
 0x404   : > { %v1848_v13 = vpop.f32.mrf.mxu1 }
 0x405   : > { %v1888_v2 = vpop.f32.mrf.mxu0  ;;  %v1893_v3 = vsel %vm655_vm2, %v1890_v1, 0.0  ;;  %v1896_v4 = vmul.f32 %v1890_v1, %v1890_v1 }
 0x406   : > { %1894 = vadd.xlane.f32.xlu1 %v1893_v3 }
 0x407   : > { %v1897_v5 = vsel %vm655_vm2, %v1896_v4, 0.0 }
 0x40a   : > { %1898 = vadd.xlane.f32.xlu1 %v1897_v5 }
 0x48f   : > { %v1895_v7 = vpop.xlane.xlu1 %1894 }
 0x490   : > { %v1900_v8 = vmul.f32 0.03125, %v1895_v7 }
 0x492   : > { %v1902_v6 = vmul.f32 %v1900_v8, %v1900_v8  ;;  %v1904_v14 = vsub.f32 %v1890_v1, %v1900_v8 }
 0x493   : > { %v1899_v9 = vpop.xlane.xlu1 %1898 }
 0x494   : > { %v1901_v10 = vmul.f32 0.03125, %v1899_v9 }
 0x496   : > { %v1903_v11 = vsub.f32 %v1901_v10, %v1902_v6 }
 0x498   : > { %v1905_v58 = vadd.f32 1e-05, %v1903_v11 }
 0x49a   : > { %2331 = vrsqrt.f32 %v1905_v58 }
 0x4a7   : > { %v2332_v62 = vpop.eup %2331 }
 0x4a8   : > { %v1907_v15 = vmul.f32 %v2332_v62, %v1904_v14 }
 0x4aa   : > { %v1914_v17 = vmul.f32 %v2223_v63, %v1907_v15 }
 0x4ac   : > { %v1921_v18 = vadd.f32 %v2224_v16, %v1914_v17 }
 0x4ae   : > { %1922 = vst.msk [vmem:[#allocation13] sm:$0xff] %vm655_vm2, %v1921_v18 }
 0x4af   : > { %2512 = shalt.err (!%p2509_p2)
}
 0x4b0   : > { %s3212_s20 = sld [smem:[#allocation27_spill]] }
 0x4b6   : > { %2259 = dma.vmem_to_hbm [thread:$0]  (%p2285_p12), %s1931_s14, 128, %s3212_s20, [#allocation4]  }
 0x4b7   : > { %2556 = dma.done.wait (%p2285_p12), [#allocation4], 128  }
 0x4b8   : > { %2558 = vsyncadd (%p2285_p12), [#allocation4], 4294967168 }
 0x4b9 PF: > { %s3213_s20 = sld [smem:[#allocation20_spill]]  ;;  %s3216_s17 = smov %s2565_s18 }
 0x4ba   : > { %s3214_s12 = sld [smem:[#allocation19_spill]] }
 0x4bb   : > { %s3215_s19 = sld [smem:[#allocation21_spill]] }
 0x4bf   : > { %p29_p10 = scmp.ge.s32.totalorder %s3213_s20, 4  }
 0x4c0   : > { %s3217_s18 = smov %s3214_s12 }
 0x4c1   :  { %31 = sbr.rel (!%p29_p10) target bundleno = 16 (0x10), region = 173 }
 0x4c6   :  { %1943 = vsyncpa [#allocation3], 1 }
 0x4c7   :  { %1945 = vsyncpa [#allocation3 + $0x1], 1 }
 0x4c8   :  { %1946 = vsyncpa [#allocation6], 1 }
 0x4c9   :  { %1948 = vsyncpa [#allocation6 + $0x1], 1 }
 0x4ca   :  { %1949 = vsyncpa [#allocation9], 1 }
 0x4cb   :  { %1951 = vsyncpa [#allocation9 + $0x1], 1 }
 0x4cc   :  { %1952 = vsyncpa [#allocation12], 1 }
 0x4cd   :  { %1954 = vsyncpa [#allocation12 + $0x1], 1 }
 0x4ce   :  { %1955 = vsyncpa [#allocation4], 1 }
 0x4cf   :  { %1957 = vsyncpa [#allocation4 + $0x1], 1 }

</bundles_post_ra>
